<compile_context>
chip_gen: v5e
topology: v5e:2x2
jax: 0.10.0
libtpu: 0.0.40
codegen_flags: <defaults>
</compile_context>

<pallas_src>
import functools

import jax
import jax.numpy as jnp
from jax.experimental import pallas as pl
from jax.experimental.pallas import tpu as pltpu


def _dim_reduce_kernel(x_ref, w_ref, bias_ref, o_ref, *, negative_slope):
    # x_ref:    (Bb, Cin, T)   batch-block of HW tiles, channels on sublanes
    # w_ref:    (Cout, Cin)    1x1 conv weight with BN scale pre-folded
    # bias_ref: (Cout, 1)      folded BN bias (beta - mean * scale), f32
    # o_ref:    (Bb, Cout, T)  lane-dense output tiles
    w = w_ref[...]
    b = bias_ref[...]
    for i in range(x_ref.shape[0]):           # Bb is small & static -> unrolled
        y = jnp.dot(w, x_ref[i], preferred_element_type=jnp.float32)
        y = y + b
        if negative_slope == 0.0:             # relu
            y = jnp.maximum(y, 0.0)
        elif negative_slope is not None:      # leakyrelu
            y = jnp.where(y > 0.0, y, negative_slope * y)
        o_ref[i] = y.astype(o_ref.dtype)


def _round_down_mult(v, m):
    return max(m, (v // m) * m)


def _choose_tiling(N, Cin, Cout, HW, in_bytes, out_bytes,
                   target_step_bytes, vmem_budget_bytes, max_batch_block):
    """Pick (batch_block, hw_tile): big per-step DMAs under a VMEM budget."""
    hw_ceil = pl.cdiv(HW, 128) * 128

    # Biggest lane-dense HW tile we would like (256-aligned when possible).
    tile = min(hw_ceil, 2048)
    if tile >= 256:
        tile = (tile // 256) * 256

    # Batch-block to top up the per-step x payload when Cin is small.
    bb = 1
    while (bb < N and bb < max_batch_block
           and bb * Cin * tile * in_bytes < target_step_bytes):
        bb += 1

    def vmem_bytes(bb_, tile_):
        return (2 * bb_ * Cin * tile_ * in_bytes      # x (double buffered)
                + 2 * bb_ * Cout * tile_ * out_bytes  # out (double buffered)
                + 2 * Cout * Cin * in_bytes           # weight (resident)
                + 2 * Cout * 4)                       # bias

    # Shrink (batch block first, then lane tile) until we fit the budget.
    while vmem_bytes(bb, tile) > vmem_budget_bytes and bb > 1:
        bb -= 1
    while vmem_bytes(bb, tile) > vmem_budget_bytes and tile > 128:
        tile = _round_down_mult(tile // 2, 128)

    # Guarantee >= 2 grid steps so both v7x TensorCores get work.
    if pl.cdiv(N, bb) * pl.cdiv(HW, tile) < 2:
        if tile >= 256:
            tile = _round_down_mult(tile // 2, 128)
        elif bb > 1:
            bb = max(1, bb // 2)
    return bb, tile


def dim_reduce_layer(x_nchw, conv_w, gamma, beta, running_mean, running_var,
                     eps=1e-5, nonlinear="relu", compute_dtype=None,
                     target_step_bytes=1 << 20, vmem_budget_bytes=24 << 20):
    """Forward pass of DimReduceLayer (eval-mode BatchNorm).

    x_nchw : (N, Cin, H, W)
    conv_w : (Cout, Cin)   1x1 conv weight with trailing 1x1 spatial dims squeezed
    gamma, beta, running_mean, running_var : (Cout,) BatchNorm2d buffers
    returns: (N, Cout, H, W)
    """
    N, Cin, H, W = x_nchw.shape
    Cout = conv_w.shape[0]
    HW = H * W

    # ---- Fold BatchNorm (inference) into the weight and a per-channel bias.
    scale = gamma * jax.lax.rsqrt(running_var + eps)          # (Cout,)
    w_folded = conv_w * scale[:, None]                        # (Cout, Cin)
    bias = (beta - running_mean * scale).reshape(Cout, 1)     # (Cout, 1)
    bias = bias.astype(jnp.float32)

    # ---- NCHW-native flatten (free metadata reshape); no pad, no post-slice.
    x_flat = x_nchw.reshape(N, Cin, HW)
    if compute_dtype is not None:        # e.g. jnp.bfloat16 on v6e/v7x
        x_flat = x_flat.astype(compute_dtype)
        w_folded = w_folded.astype(compute_dtype)

    out_dtype = x_nchw.dtype
    in_bytes = jnp.dtype(x_flat.dtype).itemsize
    out_bytes = jnp.dtype(out_dtype).itemsize

    bb, tile = _choose_tiling(N, Cin, Cout, HW, in_bytes, out_bytes,
                              target_step_bytes, vmem_budget_bytes,
                              max_batch_block=8)
    grid = (pl.cdiv(N, bb), pl.cdiv(HW, tile))

    if nonlinear == "relu":
        negative_slope = 0.0
    elif nonlinear == "leakyrelu":
        negative_slope = 0.1
    else:
        negative_slope = None   # no activation

    # Advisory cost, consistent with what the kernel actually touches.
    cost = pl.CostEstimate(
        flops=2 * N * HW * Cin * Cout,
        transcendentals=0,
        bytes_accessed=(in_bytes * N * Cin * HW         # x read once
                        + in_bytes * Cout * Cin         # weight fetched once
                        + 4 * Cout                      # bias fetched once
                        + out_bytes * N * Cout * HW),   # output written once
    )

    out_flat = pl.pallas_call(
        functools.partial(_dim_reduce_kernel, negative_slope=negative_slope),
        out_shape=jax.ShapeDtypeStruct((N, Cout, HW), out_dtype),
        grid_spec=pltpu.PrefetchScalarGridSpec(
            num_scalar_prefetch=0,
            grid=grid,
            in_specs=[
                # x: one batch-block of one HW tile.
                pl.BlockSpec((bb, Cin, tile), lambda n, t: (n, 0, t)),
                # weight / bias: constant block index -> resident in VMEM.
                pl.BlockSpec((Cout, Cin), lambda n, t: (0, 0)),
                pl.BlockSpec((Cout, 1), lambda n, t: (0, 0)),
            ],
            out_specs=pl.BlockSpec((bb, Cout, tile), lambda n, t: (n, 0, t)),
        ),
        compiler_params=pltpu.CompilerParams(
            dimension_semantics=("parallel", "parallel"),
            vmem_limit_bytes=32 * 1024 * 1024),
        cost_estimate=cost,
    )(x_flat, w_folded, bias)

    return out_flat.reshape(N, Cout, H, W)


if __name__ == "__main__":
    key = jax.random.PRNGKey(0)
    N, Cin, Cout, H, W = 2, 8, 4, 16, 16

    k_x, k_w, k_g, k_b, k_m, k_v = jax.random.split(key, 6)
    x = jax.random.normal(k_x, (N, Cin, H, W), dtype=jnp.float32)

    # Parameters per the module's __init__:
    #   Conv2d(in, out, 1, bias=False) -> weight (Cout, Cin, 1, 1) (squeezed here)
    #   BatchNorm2d(out)               -> gamma, beta, running_mean, running_var (Cout,)
    conv_w = jax.random.normal(k_w, (Cout, Cin), dtype=jnp.float32) * 0.1
    gamma = 1.0 + 0.1 * jax.random.normal(k_g, (Cout,), dtype=jnp.float32)
    beta = 0.1 * jax.random.normal(k_b, (Cout,), dtype=jnp.float32)
    running_mean = 0.05 * jax.random.normal(k_m, (Cout,), dtype=jnp.float32)
    running_var = jnp.abs(1.0 + 0.1 * jax.random.normal(k_v, (Cout,), dtype=jnp.float32))

    fwd = jax.jit(functools.partial(dim_reduce_layer, eps=1e-5, nonlinear="relu"))
    out = jax.block_until_ready(fwd(x, conv_w, gamma, beta, running_mean, running_var))

    # Plain-JAX reference (1x1 conv as einsum + BN + ReLU).
    eps = 1e-5
    y_ref = jnp.einsum("nchw,oc->nohw", x, conv_w)
    s = gamma / jnp.sqrt(running_var + eps)
    b = beta - running_mean * s
    y_ref = jnp.maximum(y_ref * s[None, :, None, None] + b[None, :, None, None], 0.0)

    assert out.shape == (N, Cout, H, W)
    assert jnp.allclose(out, y_ref, atol=1e-4, rtol=1e-4)
    print("KERNEL_OK")
</pallas_src>

<mosaic_0001>
module attributes {stable_mosaic.version = 11 : i64} {
  func.func @_dim_reduce_kernel(%arg0: i32, %arg1: i32, %arg2: memref<2x8x128xf32, #tpu.memory_space<vmem>>, %arg3: memref<4x8xf32, #tpu.memory_space<vmem>>, %arg4: memref<4x1xf32, #tpu.memory_space<vmem>>, %arg5: memref<2x4x128xf32, #tpu.memory_space<vmem>>) attributes {dimension_semantics = [#tpu.dimension_semantics<parallel>, #tpu.dimension_semantics<parallel>], iteration_bounds = array<i64: 1, 2>, scalar_prefetch = 0 : i64, scratch_operands = 0 : i64, tpu.core_type = #tpu.core_type<tc>, window_params = [{transform_indices = @transform_0, window_bounds = array<i64: 2, 8, 128>}, {pipeline_mode = #tpu.pipeline_mode<synchronous>, transform_indices = @transform_1, window_bounds = array<i64: 4, 8>}, {pipeline_mode = #tpu.pipeline_mode<synchronous>, transform_indices = @transform_2, window_bounds = array<i64: 4, 1>}, {transform_indices = @transform_3, window_bounds = array<i64: 2, 4, 128>}]} {
    %c0 = arith.constant 0 : index
    %c0_0 = arith.constant 0 : index
    %0 = vector.load %arg3[%c0, %c0_0] : memref<4x8xf32, #tpu.memory_space<vmem>>, vector<4x8xf32>
    %c0_1 = arith.constant 0 : index
    %c0_2 = arith.constant 0 : index
    %1 = vector.load %arg4[%c0_1, %c0_2] : memref<4x1xf32, #tpu.memory_space<vmem>>, vector<4x1xf32>
    %c0_3 = arith.constant 0 : index
    %c0_4 = arith.constant 0 : index
    %c0_5 = arith.constant 0 : index
    %2 = vector.load %arg2[%c0_3, %c0_4, %c0_5] : memref<2x8x128xf32, #tpu.memory_space<vmem>>, vector<1x8x128xf32>
    %3 = vector.shape_cast %2 : vector<1x8x128xf32> to vector<8x128xf32>
    %cst = arith.constant dense<0.000000e+00> : vector<4x128xf32>
    %4 = tpu.matmul %0, %3, %cst {dimension_numbers = #tpu.dot_dimension_numbers<[1], [0], [0], [1], [0, 0, 1, 1], [], []>} : vector<4x8xf32>, vector<8x128xf32>, vector<4x128xf32> -> vector<4x128xf32>
    %5 = vector.broadcast %1 : vector<4x1xf32> to vector<4x128xf32>
    %6 = arith.addf %4, %5 : vector<4x128xf32>
    %cst_6 = arith.constant 0.000000e+00 : f32
    %7 = vector.broadcast %cst_6 : f32 to vector<4x128xf32>
    %8 = arith.maximumf %6, %7 : vector<4x128xf32>
    %c0_7 = arith.constant 0 : index
    %c0_8 = arith.constant 0 : index
    %c0_9 = arith.constant 0 : index
    %9 = vector.load %arg5[%c0_7, %c0_8, %c0_9] : memref<2x4x128xf32, #tpu.memory_space<vmem>>, vector<1x4x128xf32>
    %10 = vector.shape_cast %9 : vector<1x4x128xf32> to vector<4x128xf32>
    %11 = vector.shape_cast %8 : vector<4x128xf32> to vector<1x4x128xf32>
    tpu.vector_store %arg5[%c0_7, %c0_8, %c0_9], %11 {strides = array<i32>} : memref<2x4x128xf32, #tpu.memory_space<vmem>>, vector<1x4x128xf32>,
    %c1 = arith.constant 1 : index
    %c0_10 = arith.constant 0 : index
    %c0_11 = arith.constant 0 : index
    %12 = vector.load %arg2[%c1, %c0_10, %c0_11] : memref<2x8x128xf32, #tpu.memory_space<vmem>>, vector<1x8x128xf32>
    %13 = vector.shape_cast %12 : vector<1x8x128xf32> to vector<8x128xf32>
    %cst_12 = arith.constant dense<0.000000e+00> : vector<4x128xf32>
    %14 = tpu.matmul %0, %13, %cst_12 {dimension_numbers = #tpu.dot_dimension_numbers<[1], [0], [0], [1], [0, 0, 1, 1], [], []>} : vector<4x8xf32>, vector<8x128xf32>, vector<4x128xf32> -> vector<4x128xf32>
    %15 = vector.broadcast %1 : vector<4x1xf32> to vector<4x128xf32>
    %16 = arith.addf %14, %15 : vector<4x128xf32>
    %cst_13 = arith.constant 0.000000e+00 : f32
    %17 = vector.broadcast %cst_13 : f32 to vector<4x128xf32>
    %18 = arith.maximumf %16, %17 : vector<4x128xf32>
    %c1_14 = arith.constant 1 : index
    %c0_15 = arith.constant 0 : index
    %c0_16 = arith.constant 0 : index
    %19 = vector.load %arg5[%c1_14, %c0_15, %c0_16] : memref<2x4x128xf32, #tpu.memory_space<vmem>>, vector<1x4x128xf32>
    %20 = vector.shape_cast %19 : vector<1x4x128xf32> to vector<4x128xf32>
    %21 = vector.shape_cast %18 : vector<4x128xf32> to vector<1x4x128xf32>
    tpu.vector_store %arg5[%c1_14, %c0_15, %c0_16], %21 {strides = array<i32>} : memref<2x4x128xf32, #tpu.memory_space<vmem>>, vector<1x4x128xf32>,
    return
  }
  func.func @transform_0(%arg0: i32, %arg1: i32) -> (i32, i32, i32) {
    %c0_i32 = arith.constant 0 : i32
    %c0_i32_0 = arith.constant 0 : i32
    return %arg0, %c0_i32, %arg1 : i32, i32, i32
  }
  func.func @transform_1(%arg0: i32, %arg1: i32) -> (i32, i32) {
    %c0_i32 = arith.constant 0 : i32
    %c0_i32_0 = arith.constant 0 : i32
    %c0_i32_1 = arith.constant 0 : i32
    return %c0_i32, %c0_i32_0 : i32, i32
  }
  func.func @transform_2(%arg0: i32, %arg1: i32) -> (i32, i32) {
    %c0_i32 = arith.constant 0 : i32
    %c0_i32_0 = arith.constant 0 : i32
    %c0_i32_1 = arith.constant 0 : i32
    return %c0_i32, %c0_i32_0 : i32, i32
  }
  func.func @transform_3(%arg0: i32, %arg1: i32) -> (i32, i32, i32) {
    %c0_i32 = arith.constant 0 : i32
    %c0_i32_0 = arith.constant 0 : i32
    return %arg0, %c0_i32, %arg1 : i32, i32, i32
  }
}

</mosaic_0001>

<bundles_post_ra>
// kernel: dim_reduce_layer.1
= control target key start
LH: loop header
LB: loop body
LE: loop exit
PB: predicated region body
PF: predicated region fallthrough
CT: control target
= control target key end

     0   :  { %s530_s12 = smov 0   ;;  %s532_s13 = smov 0   ;;  %s608_s0 = inlined_call_operand.vmem [shape: f32[2,8,256], index: 0, kind: input, shape index: {}]   ;;  %s609_s1 = inlined_call_operand.vmem [shape: f32[4,8], index: 1, kind: input, shape index: {}]   ;;  %s610_s2 = inlined_call_operand.vmem [shape: f32[4,1], index: 2, kind: input, shape index: {}]   ;;  %s611_s3 = inlined_call_operand.vmem [shape: f32[2,4,256], index: 3, kind: output, shape index: {}]  }
   0x1   :  { %s534_s14 = smov 0   ;;  %s536_s15 = smov 0  }
   0x2   :  { %s538_s16 = smov 0  }
   0x3 LB: > { %s22_s17 = sadd.s32 1, %s503_s15  ;;  %s410_s18 = sadd.s32 4294967295, %s507_s16   ;;  %s507_s16 = sphi %s538_s16, %s13_s16   ;;  %s503_s15 = sphi %s536_s15, %s616_s15   ;;  %s499_s14 = sphi %s534_s14, %s615_s14   ;;  %s495_s13 = sphi %s532_s13, %s614_s13   ;;  %s491_s12 = sphi %s530_s12, %s613_s12  }
   0x4   : > { %p23_p0 = scmp.ge.s32.totalorder %s22_s17, 2  ;;  %p41_p1 = scmp.ne.s32.totalorder %s495_s13, %s491_s12 }
   0x5   : > { %p42_p2 = scmp.eq.s32.totalorder %s507_s16, 0  ;;  %p115_p4 = scmp.eq.s32.totalorder %s410_s18, 1 }
   0x6   : > { %s618_s17 = smov (%p23_p0, %s22_s17), 0  ;;  %s34_s20 = sadd.s32 1, %s495_s13 }
   0x7   : > { %p43_p3 = por %p42_p2, %p41_p1  ;;  %s30_s19 = ssub.s32 %s503_s15, %s618_s17 }
   0x8   : > { %p32_p5 = scmp.eq.s32.totalorder %s30_s19, 0  ;;  %p565_p6 = por %p115_p4, %p41_p1 }
   0x9   : > { %p413_p7 = scmp.ge.s32.totalorder %s507_s16, 2 }
   0xa   : > { %s570_s22 = scalar_select %p32_p5, %s495_s13, %s34_s20  }
   0xb   : > { %143 = sbr.rel (%p413_p7) target bundleno = 22 (0x16), region = 24 }
  0x10   : > { %146 = sbr.rel (!%p43_p3) target bundleno = 22 (0x16), region = 28  ;;  %s148_s23 = sand.u32 (%p43_p3), 1, %s495_s13  }
  0x11   : > { %s415_s24 = sshll.u32 (%p43_p3), %s503_s15, 3  ;;  %s414_s25 = sshll.u32 (%p43_p3), %s148_s23, 4 }
  0x12   : > { %s155_s28 = scalar_lea.vmem (%p43_p3), %s608_s0, %s415_s24  ;;  %s150_s29 = scalar_lea.vmem (%p43_p3), [#allocation2], %s414_s25 }
  0x13   : > { %v186_v0 = vld [vmem:[%s155_s28] sm:$0xff] (%p43_p3)  ;;  %v188_v1 = vld [vmem:[%s155_s28 + $0x10] sm:$0xff] (%p43_p3) }
  0x14   : > { %187 = vst [vmem:[%s150_s29] sm:$0xff] (%p43_p3), %v186_v0 }
  0x15   : > { %189 = vst [vmem:[%s150_s29 + $0x8] sm:$0xff] %v188_v1 }
  0x16 PF: > { %p416_p8 = scmp.ge.s32.totalorder %s507_s16, 1  ;;  %p194_p9 = scmp.lt.s32.totalorder %s507_s16, 3 }
  0x18   : > { %p195_p10 = pnand %p416_p8, %p194_p9 }
  0x19   : > { %s201_s30 = sand.u32 (!%p195_p10), 1, %s491_s12  }
  0x1a   : > { %198 = sbr.rel (%p195_p10) target bundleno = 174 (0xae), region = 66  ;;  %s417_s4 = sshll.u32 (!%p195_p10), %s201_s30, 4 }
  0x1b   : > { %s203_s9 = scalar_lea.vmem (!%p195_p10), [#allocation2], %s417_s4  ;;  %s418_s10 = sshll.u32 (!%p195_p10), %s201_s30, 3 }
  0x1c   : > { %s222_s11 = scalar_lea.vmem (!%p195_p10), [#allocation3], %s418_s10 }
  0x1f   : > { %v509_v2 = vmov 0   ;;  %v226_v3 = vld [vmem:[%s610_s2] sm:$0xf]  ;;  %vm233_vm0 = vcmask 64512   ;;  %v420_v6 = vld [vmem:[%s203_s9 + $0x8] sm:$0xff]  ;;  %s424_s12 = sshll.u32 (%p565_p6), %s499_s14, 2 }
  0x20   : > { %468 = vset.pattern.permute.xlu0 %v509_v2  ;;  %v225_v4 = vld [vmem:[%s609_s1] sm:$0xf]  ;;  %276 = vmatpush.msra.mxu1 %v420_v6  ;;  %s295_s20 = scalar_lea.vmem (%p565_p6), %s611_s3, %s424_s12 }
  0x21   : > { %230 = vperm.xlu0 %468, %v226_v3   ;;  %v227_v5 = vld [vmem:[%s203_s9] sm:$0xff]  ;;  %421 = vmatmul.msk.f32.vlgmr.msra.gmra.mxu1 %vm233_vm0, %v225_v4 }
  0x22   : > { %252 = vmatpush.msra.mxu0 %v227_v5 }
  0x23   : > { %419 = vmatmul.msk.f32.vlgmr.msra.gmra.mxu0 %vm233_vm0, %v225_v4 }
  0x93   : > { %v231_v7 = vpop.permute.xlu0 %230 }
  0x9e   : > { %v278_v9 = vpop.f32.mrf.mxu1 }
  0x9f   : > { %v279_v11 = vadd.f32 %v278_v9, %v231_v7 }
  0xa0   : > { %v254_v8 = vpop.f32.mrf.mxu0 }
  0xa1   : > { %v255_v10 = vadd.f32 %v254_v8, %v231_v7  ;;  %v281_v13 = vmax.f32 %v279_v11, 0.0  ;;  %290 = sbr.rel (!%p565_p6) target bundleno = 174 (0xae), region = 74 }
  0xa3   : > { %v257_v12 = vmax.f32 %v255_v10, 0.0  ;;  %422 = vst [vmem:[%s222_s11 + $0x4] sm:$0xf] %v281_v13 }
  0xa5   : > { %258 = vst [vmem:[%s222_s11] sm:$0xf] %v257_v12 }
  0xaa   : > { %v314_v15 = vld [vmem:[%s222_s11 + $0x4] sm:$0xf] }
  0xab   : > { %315 = vst [vmem:[%s295_s20 + $0x8] sm:$0xf] %v314_v15 }
  0xac   : > { %v312_v14 = vld [vmem:[%s222_s11] sm:$0xf] }
  0xad   : > { %313 = vst [vmem:[%s295_s20] sm:$0xf] %v312_v14 }
  0xae PF: > { %s13_s16 = sadd.s32 1, %s507_s16   ;;  %s613_s12 = smov %s495_s13 }
  0xaf   : > { %p10_p11 = scmp.ge.s32.totalorder %s13_s16, 4   ;;  %s614_s13 = smov %s570_s22 }
  0xb0   : > { %s615_s14 = smov %s503_s15  ;;  %s616_s15 = smov %s618_s17 }
  0xb1   :  { %12 = sbr.rel (!%p10_p11) target bundleno = 3 (0x3), region = 148 }

</bundles_post_ra>
